<compile_context>
chip_gen: v7x
topology: tpu7x:2x2x1
jax: 0.10.0
libtpu: 0.0.40
codegen_flags: <defaults>
</compile_context>

<pallas_src>
import jax
import jax.numpy as jnp
from jax.experimental import pallas as pl
from jax.experimental.pallas import tpu as pltpu


def _critic_kernel(x_ref, w0_ref, b0_ref, w1_ref, b1_ref, w2_ref, b2_ref, out_ref):
    """One (8, TB) tile of states (batch on lanes) through the full critic MLP.

    x_ref : (8, TB)    f32   (tile of the transposed batch)
    w0    : (128, 8)   bf16  b0: (128, 1) f32   -- resident in VMEM across the grid
    w1    : (128, 128) bf16  b1: (128, 1) f32
    w2    : (1, 128)   f32   b2: (1, 1)   f32 in SMEM (scalar)
    out   : (1, TB)    f32   softmax over the (width-1) feature dim
    """
    x = x_ref[...]                                           # (8, TB) f32

    # --- fc0 + ReLU on the MXU: (128,8)@(8,TB). K=8 underutilizes the MXU but the
    #     MXU has slack; the cast of the (8,TB) tile is ~1/16 of a VPU pass.
    h0 = jnp.dot(w0_ref[...], x.astype(jnp.bfloat16),
                 preferred_element_type=jnp.float32) + b0_ref[...]
    h0 = jnp.maximum(h0, 0.0)                                # (128, TB) f32

    # --- fc1 + ReLU: the heavy matmul. bf16 operands, f32 accumulation.
    h1 = jnp.dot(w1_ref[...], h0.astype(jnp.bfloat16),
                 preferred_element_type=jnp.float32) + b1_ref[...]
    h1 = jnp.maximum(h1, 0.0)                                # (128, TB) f32

    # --- policy head (128 -> 1): (1,128)@(128,TB) -> (1,TB). M=1, f32 cost is
    #     negligible; bias read as a scalar from SMEM.
    logits = jnp.dot(w2_ref[...], h1,
                     preferred_element_type=jnp.float32) + b2_ref[0, 0]

    # Softmax over a width-1 axis: max == logits and sum(exp(0)) == 1, so the
    # exact result is exp(logits - logits).  Keeps F.softmax semantics
    # (including NaN/inf propagation) without the dead max/sum/reciprocal work.
    out_ref[...] = jnp.exp(logits - logits)                  # (1, TB) lane-dense store


def critic_forward(states, params, *, block_cols=2048, use_pallas=None):
    """Batched CriticModel.forward.

    states: (8,) single environment state (matches the PyTorch _preprocessor,
            which expand_dims to (1, 8)) or (B, 8) batch of states.
    returns: (B, 1) f32 softmax output (B = 1 for a single state).
    """
    x = jnp.asarray(states, dtype=jnp.float32)
    if x.ndim == 1:                       # _preprocessor: expand_dims(state, 0)
        x = x[None, :]
    B = x.shape[0]

    w0, b0, w1, b1, w2, b2 = params       # (8,128),(1,128),(128,128),(1,128),(128,1),(1,1)

    if use_pallas is None:
        use_pallas = B >= 512             # small batches: launch/padding overhead dominates
    if not use_pallas:
        h0 = jnp.maximum(x @ w0 + b0, 0.0)
        h1 = jnp.maximum(h0 @ w1 + b1, 0.0)
        return jax.nn.softmax(h1 @ w2 + b2, axis=-1)

    # ---- layout plumbing: batch on lanes --------------------------------------
    xt = x.T                                                  # (8, B)
    w0t = w0.T.astype(jnp.bfloat16)                           # (128, 8)
    b0c = b0.reshape(128, 1)                                  # (128, 1)
    w1t = w1.T.astype(jnp.bfloat16)                           # (128, 128)
    b1c = b1.reshape(128, 1)                                  # (128, 1)
    w2t = w2.T                                                # (1, 128)
    b2s = b2.reshape(1, 1)                                    # scalar -> SMEM

    # Lane tile: multiple of 128, capped for VMEM safety (re-sweep for v7x's
    # smaller scoped VMEM if pushing beyond 8192).
    TB = min(int(block_cols), 128 * pl.cdiv(B, 128), 8192)
    TB = max(128, (TB // 128) * 128)
    Bp = TB * pl.cdiv(B, TB)
    if Bp != B:
        xt = jnp.pad(xt, ((0, 0), (0, Bp - B)))
    grid = (Bp // TB,)

    resident = lambda shape: pl.BlockSpec(shape, lambda i: (0, 0))  # weights fetched once

    out_t = pl.pallas_call(
        _critic_kernel,
        out_shape=jax.ShapeDtypeStruct((1, Bp), jnp.float32),
        grid=grid,
        in_specs=[
            pl.BlockSpec((8, TB), lambda i: (0, i)),            # x tile (batch on lanes)
            resident((128, 8)),                                 # w0^T (bf16)
            resident((128, 1)),                                 # b0
            resident((128, 128)),                               # w1^T (bf16)
            resident((128, 1)),                                 # b1
            resident((1, 128)),                                 # w2^T
            pl.BlockSpec(memory_space=pltpu.MemorySpace.SMEM),  # b2 scalar
        ],
        out_specs=pl.BlockSpec((1, TB), lambda i: (0, i)),      # lane-dense output
        compiler_params=pltpu.CompilerParams(
            dimension_semantics=("parallel",),                  # batch axis splits across TCs
        ),
    )(xt, w0t, b0c, w1t, b1c, w2t, b2s)

    return out_t[0, :B].reshape(B, 1)


def init_params(key):
    """PyTorch nn.Linear default init (U[-1/sqrt(fan_in), +1/sqrt(fan_in)])."""
    def linear(k, fan_in, fan_out):
        kw, kb = jax.random.split(k)
        bound = 1.0 / jnp.sqrt(float(fan_in))
        # stored as (in, out) so the math is x @ W  (== x @ W_pt.T)
        w = jax.random.uniform(kw, (fan_in, fan_out), jnp.float32, -bound, bound)
        b = jax.random.uniform(kb, (1, fan_out), jnp.float32, -bound, bound)
        return w, b

    k0, k1, k2 = jax.random.split(key, 3)
    w0, b0 = linear(k0, 8, 128)
    w1, b1 = linear(k1, 128, 128)
    w2, b2 = linear(k2, 128, 1)
    return (w0, b0, w1, b1, w2, b2)


def _reference(x, params):
    w0, b0, w1, b1, w2, b2 = params
    h0 = jnp.maximum(x @ w0 + b0, 0.0)
    h1 = jnp.maximum(h0 @ w1 + b1, 0.0)
    return jax.nn.softmax(h1 @ w2 + b2, axis=-1)


if __name__ == "__main__":
    root = jax.random.PRNGKey(0)
    k_state, k_batch, k_params = jax.random.split(root, 3)
    params = init_params(k_params)

    # 1) module-faithful single-state path, forced through the Pallas kernel.
    state = jax.random.normal(k_state, (8,), dtype=jnp.float32)
    out1 = jax.block_until_ready(critic_forward(state, params, use_pallas=True))
    ref1 = _reference(jnp.expand_dims(state, 0), params)
    assert out1.shape == (1, 1)
    assert jnp.allclose(out1, ref1, atol=1e-5), (out1, ref1)

    # 2) small multi-tile batch through the kernel (block_cols=128 -> grid of 2 tiles).
    B = 256
    states = jax.random.normal(k_batch, (B, 8), dtype=jnp.float32)
    outB = jax.block_until_ready(
        critic_forward(states, params, block_cols=128, use_pallas=True))
    refB = _reference(states, params)
    assert outB.shape == (B, 1)
    assert jnp.allclose(outB, refB, atol=1e-5), (outB, refB)

    # 3) auto path at tiny batch takes the plain-jnp fast path.
    out_small = jax.block_until_ready(critic_forward(states[:8], params))
    assert out_small.shape == (8, 1)
    assert jnp.allclose(out_small, refB[:8], atol=1e-5)

    print("KERNEL_OK")
</pallas_src>

<mosaic_0001>
module attributes {stable_mosaic.version = 11 : i64} {
  func.func @_critic_kernel(%arg0: i32, %arg1: memref<8x128xf32, #tpu.memory_space<vmem>>, %arg2: memref<128x8xbf16, #tpu.memory_space<vmem>>, %arg3: memref<128x1xf32, #tpu.memory_space<vmem>>, %arg4: memref<128x128xbf16, #tpu.memory_space<vmem>>, %arg5: memref<128x1xf32, #tpu.memory_space<vmem>>, %arg6: memref<1x128xf32, #tpu.memory_space<vmem>>, %arg7: memref<1x1xf32, #tpu.memory_space<smem>>, %arg8: memref<1x128xf32, #tpu.memory_space<vmem>>) attributes {dimension_semantics = [#tpu.dimension_semantics<parallel>], iteration_bounds = array<i64: 1>, scalar_prefetch = 0 : i64, scratch_operands = 0 : i64, tpu.core_type = #tpu.core_type<tc>, window_params = [{transform_indices = @transform_0, window_bounds = array<i64: 8, 128>}, {pipeline_mode = #tpu.pipeline_mode<synchronous>, transform_indices = @transform_1, window_bounds = array<i64: 128, 8>}, {pipeline_mode = #tpu.pipeline_mode<synchronous>, transform_indices = @transform_2, window_bounds = array<i64: 128, 1>}, {pipeline_mode = #tpu.pipeline_mode<synchronous>, transform_indices = @transform_3, window_bounds = array<i64: 128, 128>}, {pipeline_mode = #tpu.pipeline_mode<synchronous>, transform_indices = @transform_4, window_bounds = array<i64: 128, 1>}, {pipeline_mode = #tpu.pipeline_mode<synchronous>, transform_indices = @transform_5, window_bounds = array<i64: 1, 128>}, {transform_indices = @transform_6, window_bounds = array<i64: 1, 1>}, {transform_indices = @transform_7, window_bounds = array<i64: 1, 128>}]} {
    %c0 = arith.constant 0 : index
    %c0_0 = arith.constant 0 : index
    %0 = vector.load %arg1[%c0, %c0_0] : memref<8x128xf32, #tpu.memory_space<vmem>>, vector<8x128xf32>
    %c0_1 = arith.constant 0 : index
    %c0_2 = arith.constant 0 : index
    %1 = vector.load %arg2[%c0_1, %c0_2] : memref<128x8xbf16, #tpu.memory_space<vmem>>, vector<128x8xbf16>
    %2 = arith.truncf %0 : vector<8x128xf32> to vector<8x128xbf16>
    %cst = arith.constant dense<0.000000e+00> : vector<128x128xf32>
    %3 = tpu.matmul %1, %2, %cst {dimension_numbers = #tpu.dot_dimension_numbers<[1], [0], [0], [1], [0, 0, 1, 1], [], []>} : vector<128x8xbf16>, vector<8x128xbf16>, vector<128x128xf32> -> vector<128x128xf32>
    %c0_3 = arith.constant 0 : index
    %c0_4 = arith.constant 0 : index
    %4 = vector.load %arg3[%c0_3, %c0_4] : memref<128x1xf32, #tpu.memory_space<vmem>>, vector<128x1xf32>
    %5 = vector.broadcast %4 : vector<128x1xf32> to vector<128x128xf32>
    %6 = arith.addf %3, %5 : vector<128x128xf32>
    %cst_5 = arith.constant 0.000000e+00 : f32
    %7 = vector.broadcast %cst_5 : f32 to vector<128x128xf32>
    %8 = arith.maximumf %6, %7 : vector<128x128xf32>
    %c0_6 = arith.constant 0 : index
    %c0_7 = arith.constant 0 : index
    %9 = vector.load %arg4[%c0_6, %c0_7] : memref<128x128xbf16, #tpu.memory_space<vmem>>, vector<128x128xbf16>
    %10 = arith.truncf %8 : vector<128x128xf32> to vector<128x128xbf16>
    %cst_8 = arith.constant dense<0.000000e+00> : vector<128x128xf32>
    %11 = tpu.matmul %9, %10, %cst_8 {dimension_numbers = #tpu.dot_dimension_numbers<[1], [0], [0], [1], [0, 0, 1, 1], [], []>} : vector<128x128xbf16>, vector<128x128xbf16>, vector<128x128xf32> -> vector<128x128xf32>
    %c0_9 = arith.constant 0 : index
    %c0_10 = arith.constant 0 : index
    %12 = vector.load %arg5[%c0_9, %c0_10] : memref<128x1xf32, #tpu.memory_space<vmem>>, vector<128x1xf32>
    %13 = vector.broadcast %12 : vector<128x1xf32> to vector<128x128xf32>
    %14 = arith.addf %11, %13 : vector<128x128xf32>
    %cst_11 = arith.constant 0.000000e+00 : f32
    %15 = vector.broadcast %cst_11 : f32 to vector<128x128xf32>
    %16 = arith.maximumf %14, %15 : vector<128x128xf32>
    %c0_12 = arith.constant 0 : index
    %c0_13 = arith.constant 0 : index
    %17 = vector.load %arg6[%c0_12, %c0_13] : memref<1x128xf32, #tpu.memory_space<vmem>>, vector<1x128xf32>
    %cst_14 = arith.constant dense<0.000000e+00> : vector<1x128xf32>
    %18 = tpu.matmul %17, %16, %cst_14 {dimension_numbers = #tpu.dot_dimension_numbers<[1], [0], [0], [1], [0, 0, 1, 1], [], []>} : vector<1x128xf32>, vector<128x128xf32>, vector<1x128xf32> -> vector<1x128xf32>
    %c0_15 = arith.constant 0 : index
    %c0_16 = arith.constant 0 : index
    %19 = memref.load %arg7[%c0_15, %c0_16] : memref<1x1xf32, #tpu.memory_space<smem>>
    %20 = vector.broadcast %19 : f32 to vector<1x128xf32>
    %21 = arith.addf %18, %20 : vector<1x128xf32>
    %22 = arith.subf %21, %21 : vector<1x128xf32>
    %23 = math.exp %22 : vector<1x128xf32>
    %c0_17 = arith.constant 0 : index
    %c0_18 = arith.constant 0 : index
    %24 = vector.load %arg8[%c0_17, %c0_18] : memref<1x128xf32, #tpu.memory_space<vmem>>, vector<1x128xf32>
    tpu.vector_store %arg8[%c0_17, %c0_18], %23 {strides = array<i32>} : memref<1x128xf32, #tpu.memory_space<vmem>>, vector<1x128xf32>,
    return
  }
  func.func @transform_0(%arg0: i32) -> (i32, i32) {
    %c0_i32 = arith.constant 0 : i32
    %c0_i32_0 = arith.constant 0 : i32
    return %c0_i32, %arg0 : i32, i32
  }
  func.func @transform_1(%arg0: i32) -> (i32, i32) {
    %c0_i32 = arith.constant 0 : i32
    %c0_i32_0 = arith.constant 0 : i32
    %c0_i32_1 = arith.constant 0 : i32
    return %c0_i32, %c0_i32_0 : i32, i32
  }
  func.func @transform_2(%arg0: i32) -> (i32, i32) {
    %c0_i32 = arith.constant 0 : i32
    %c0_i32_0 = arith.constant 0 : i32
    %c0_i32_1 = arith.constant 0 : i32
    return %c0_i32, %c0_i32_0 : i32, i32
  }
  func.func @transform_3(%arg0: i32) -> (i32, i32) {
    %c0_i32 = arith.constant 0 : i32
    %c0_i32_0 = arith.constant 0 : i32
    %c0_i32_1 = arith.constant 0 : i32
    return %c0_i32, %c0_i32_0 : i32, i32
  }
  func.func @transform_4(%arg0: i32) -> (i32, i32) {
    %c0_i32 = arith.constant 0 : i32
    %c0_i32_0 = arith.constant 0 : i32
    %c0_i32_1 = arith.constant 0 : i32
    return %c0_i32, %c0_i32_0 : i32, i32
  }
  func.func @transform_5(%arg0: i32) -> (i32, i32) {
    %c0_i32 = arith.constant 0 : i32
    %c0_i32_0 = arith.constant 0 : i32
    %c0_i32_1 = arith.constant 0 : i32
    return %c0_i32, %c0_i32_0 : i32, i32
  }
  func.func @transform_6(%arg0: i32) -> (i32, i32) {
    %c0_i32 = arith.constant 0 : i32
    %c0_i32_0 = arith.constant 0 : i32
    %c0_i32_1 = arith.constant 0 : i32
    return %c0_i32, %c0_i32_0 : i32, i32
  }
  func.func @transform_7(%arg0: i32) -> (i32, i32) {
    %c0_i32 = arith.constant 0 : i32
    %c0_i32_0 = arith.constant 0 : i32
    return %c0_i32, %arg0 : i32, i32
  }
}

</mosaic_0001>

<bundles_post_ra>
// kernel: tpu_custom_call.1
= control target key start
LH: loop header
LB: loop body
LE: loop exit
PB: predicated region body
PF: predicated region fallthrough
CT: control target
= control target key end

     0   :  { %vm208_vm0 = vcmask 1043456   ;;  %vm183_vm1 = vcmask 64512   ;;  %v922_v6 = vmov 0   ;;  %s1148_s0 = inlined_call_operand.vmem [shape: f32[8,128], index: 0, kind: input, shape index: {}]   ;;  %s1149_s1 = inlined_call_operand.vmem [shape: bf16[128,8], index: 1, kind: input, shape index: {}]   ;;  %s1150_s2 = inlined_call_operand.vmem [shape: f32[128,1], index: 2, kind: input, shape index: {}]   ;;  %s1151_s3 = inlined_call_operand.vmem [shape: bf16[128,128], index: 3, kind: input, shape index: {}]   ;;  %s1152_s4 = inlined_call_operand.vmem [shape: f32[128,1], index: 4, kind: input, shape index: {}]   ;;  %s1153_s5 = inlined_call_operand.vmem [shape: f32[1,128], index: 5, kind: input, shape index: {}]   ;;  %s1154_s6 = inlined_call_operand.<no memory space> [shape: f32[1,1], index: 6, kind: input, shape index: {}]   ;;  %s1155_s7 = inlined_call_operand.hbm [shape: f32[1,128], index: 7, kind: output, shape index: {}]  }
   0x1   :  { %v29_v0 = vld [vmem:[%s1148_s0] sm:$0xff]  ;;  %v881_v4 = vld [vmem:[%s1149_s1 + $0x8] sm:$0xff]   ;;  %v882_v5 = vld [vmem:[%s1149_s1 + $0x10] sm:$0xff]   ;;  %878 = vset.pattern.permute.xlu0 %v922_v6  ;;  %879 = vset.pattern.permute.xlu1 %v922_v6 }
   0x2   :  { %v46_v1 = vpack.c.bf16 %v29_v0, %v29_v0  ;;  %v880_v2 = vld [vmem:[%s1149_s1] sm:$0xff]   ;;  %v49_v8 = vld [vmem:[%s1150_s2 + $0x10] sm:$0xff]  ;;  %v48_v9 = vld [vmem:[%s1150_s2 + $0x8] sm:$0xff] }
   0x3   :  { %765 = vmatprep.mubr.msk.bf16.mxu0 %vm183_vm1, %v880_v2  ;;  %v47_v7 = vld [vmem:[%s1150_s2] sm:$0xff]  ;;  %75 = vperm.xlu1 %879, %v49_v8   ;;  %v50_v10 = vld [vmem:[%s1150_s2 + $0x18] sm:$0xff]  ;;  %v52_v14 = vld [vmem:[%s1150_s2 + $0x28] sm:$0xff] }
   0x4   :  { %872 = vmatprep.subr.msk.bf16.mxu0 %vm208_vm0, %v46_v1  ;;  %v210_v3 = vsel %vm208_vm0, %v46_v1, 0  ;;  %65 = vperm.xlu0 %878, %v47_v7   ;;  %v883_v11 = vld [vmem:[%s1149_s1 + $0x18] sm:$0xff]   ;;  %v884_v12 = vld [vmem:[%s1149_s1 + $0x20] sm:$0xff]   ;;  %v53_v15 = vld [vmem:[%s1150_s2 + $0x30] sm:$0xff] }
   0x5   :  { %764 = vmatpush3.bf16.msra.mxu0 %v210_v3  ;;  %v51_v13 = vld [vmem:[%s1150_s2 + $0x20] sm:$0xff]  ;;  %v885_v16 = vld [vmem:[%s1149_s1 + $0x28] sm:$0xff]   ;;  %v886_v17 = vld [vmem:[%s1149_s1 + $0x30] sm:$0xff]  }
   0x6   :  { %v54_v18 = vld [vmem:[%s1150_s2 + $0x38] sm:$0xff]  ;;  %v55_v19 = vld [vmem:[%s1150_s2 + $0x40] sm:$0xff]  ;;  %v56_v20 = vld [vmem:[%s1150_s2 + $0x48] sm:$0xff] }
   0x7   :  { %80 = vperm.xlu1 %879, %v50_v10   ;;  %v57_v21 = vld [vmem:[%s1150_s2 + $0x50] sm:$0xff] }
   0x8   :  { %766 = vmatmul.mubr.msk.bf16.vlgmr.msra.gmra.mrb[0].mxu0 %vm183_vm1, %v881_v4  ;;  %70 = vperm.xlu0 %878, %v48_v9  }
   0x9   :  { %769 = vmatprep.mubr.msk.bf16.mxu0 %vm183_vm1, %v882_v5 }
   0xb   :  { %90 = vperm.xlu1 %879, %v52_v14  }
   0xc   :  { %85 = vperm.xlu0 %878, %v51_v13  }
   0xf   :  { %100 = vperm.xlu1 %879, %v54_v18  }
  0x10   :  { %770 = vmatmul.mubr.msk.bf16.gmra.mrb[4].mxu0 %vm183_vm1, %v883_v11  ;;  %95 = vperm.xlu0 %878, %v53_v15  }
  0x11   :  { %773 = vmatprep.mubr.msk.bf16.mxu0 %vm183_vm1, %v884_v12 }
  0x14   :  { %105 = vperm.xlu0 %878, %v55_v19  }
  0x18   :  { %774 = vmatmul.mubr.msk.bf16.gmra.mrb[8].mxu0 %vm183_vm1, %v885_v16 }
  0x19   :  { %777 = vmatprep.mubr.msk.bf16.mxu0 %vm183_vm1, %v886_v17 }
  0x1a   :  { %13 = vsyncpa [#allocation4], 0  ;;  %110 = vperm.xlu1 %879, %v56_v20   ;;  %v58_v22 = vld [vmem:[%s1150_s2 + $0x58] sm:$0xff]  ;;  %115 = vperm.xlu0 %878, %v57_v21   ;;  %v59_v24 = vld [vmem:[%s1150_s2 + $0x60] sm:$0xff]  ;;  %vm924_vm2 = vmmov 0   ;;  %s926_s24 = smov [#allocation3]  }
  0x1b   :  { %v887_v23 = vld [vmem:[%s1149_s1 + $0x38] sm:$0xff]   ;;  %v60_v25 = vld [vmem:[%s1150_s2 + $0x68] sm:$0xff]  ;;  %v61_v26 = vld [vmem:[%s1150_s2 + $0x70] sm:$0xff]  ;;  %s689_s1 = sshll.u32 %s926_s24, 4  ;;  %s690_s1 = int_to_ptr.vmem [resolvable:$true] %s689_s1 }
  0x1c   :  { %v62_v27 = vld [vmem:[%s1150_s2 + $0x78] sm:$0xff]  ;;  %v349_v28 = vld [vmem:[%s1152_s4] sm:$0xff]  ;;  %v350_v29 = vld [vmem:[%s1152_s4 + $0x8] sm:$0xff]  ;;  %s898_s25 = scalar_lea.vmem %s690_s1, 16  ;;  %s902_s26 = scalar_lea.vmem %s690_s1, 32 }
  0x1d   :  { %v351_v30 = vld [vmem:[%s1152_s4 + $0x10] sm:$0xff]  ;;  %v352_v31 = vld [vmem:[%s1152_s4 + $0x18] sm:$0xff]  ;;  %v353_v32 = vld [vmem:[%s1152_s4 + $0x20] sm:$0xff]  ;;  %p899_p0 = scmp.ne.s32.totalorder %s690_s1, %s898_s25  ;;  %p903_p1 = scmp.lt.s32.totalorder %s690_s1, %s690_s1 }
  0x1e   :  { %120 = vperm.xlu1 %879, %v58_v22   ;;  %125 = vperm.xlu0 %878, %v59_v24   ;;  %v354_v33 = vld [vmem:[%s1152_s4 + $0x28] sm:$0xff]  ;;  %v355_v34 = vld [vmem:[%s1152_s4 + $0x30] sm:$0xff]  ;;  %v356_v35 = vld [vmem:[%s1152_s4 + $0x38] sm:$0xff]  ;;  %p904_p2 = scmp.lt.s32.totalorder %s902_s26, %s898_s25 }
  0x1f   :  { %v357_v36 = vld [vmem:[%s1152_s4 + $0x40] sm:$0xff]  ;;  %v358_v37 = vld [vmem:[%s1152_s4 + $0x48] sm:$0xff]  ;;  %v359_v38 = vld [vmem:[%s1152_s4 + $0x50] sm:$0xff] }
  0x20   :  { %778 = vmatmul.mubr.msk.bf16.gmra.mrb[12].mxu0 %vm183_vm1, %v887_v23  ;;  %v360_v39 = vld [vmem:[%s1152_s4 + $0x58] sm:$0xff]  ;;  %v361_v40 = vld [vmem:[%s1152_s4 + $0x60] sm:$0xff]  ;;  %v362_v41 = vld [vmem:[%s1152_s4 + $0x68] sm:$0xff]  ;;  %p905_p3 = por %p904_p2, %p903_p1 }
  0x21   :  { %v363_v42 = vld [vmem:[%s1152_s4 + $0x70] sm:$0xff]  ;;  %v364_v43 = vld [vmem:[%s1152_s4 + $0x78] sm:$0xff]  ;;  %v888_v44 = vld [vmem:[%s1151_s3] sm:$0xff]  }
  0x22   :  { %130 = vperm.xlu1 %879, %v60_v25   ;;  %135 = vperm.xlu0 %878, %v61_v26   ;;  %p906_p4 = pnand %p905_p3, %p899_p0 }
  0x23   :  { %797 = vmatprep.mubr.bf16.mxu1 %v888_v44 }
  0x26   :  { %140 = vperm.xlu1 %879, %v62_v27   ;;  %367 = vperm.xlu0 %878, %v349_v28  }
  0x2a   :  { %372 = vperm.xlu1 %879, %v350_v29   ;;  %377 = vperm.xlu0 %878, %v351_v30  }
  0x2e   :  { %382 = vperm.xlu1 %879, %v352_v31   ;;  %387 = vperm.xlu0 %878, %v353_v32  }
  0x32   :  { %392 = vperm.xlu1 %879, %v354_v33   ;;  %397 = vperm.xlu0 %878, %v355_v34  }
  0x36   :  { %402 = vperm.xlu1 %879, %v356_v35   ;;  %407 = vperm.xlu0 %878, %v357_v36  }
  0x3a   :  { %412 = vperm.xlu1 %879, %v358_v37   ;;  %417 = vperm.xlu0 %878, %v359_v38  }
  0x3e   :  { %422 = vperm.xlu1 %879, %v360_v39   ;;  %427 = vperm.xlu0 %878, %v361_v40  }
  0x42   :  { %432 = vperm.xlu1 %879, %v362_v41   ;;  %437 = vperm.xlu0 %878, %v363_v42  }
  0x46   :  { %442 = vperm.xlu1 %879, %v364_v43  }
  0x82   :  { %v76_v46 = vpop.permute.xlu1 %75 }
  0x83   :  { %v66_v45 = vpop.permute.xlu0 %65 }
  0x86   :  { %v81_v48 = vpop.permute.xlu1 %80 }
  0x87   :  { %v71_v47 = vpop.permute.xlu0 %70 }
  0x8a   :  { %v91_v50 = vpop.permute.xlu1 %90 }
  0x8b   :  { %v86_v49 = vpop.permute.xlu0 %85 }
  0x8e   :  { %v101_v55 = vpop.permute.xlu1 %100 }
  0x8f   :  { %v96_v51 = vpop.permute.xlu0 %95 }
  0x93   :  { %v106_v63 = vpop.permute.xlu0 %105 }
  0x99   :  { %v111_v3 = vpop.permute.xlu1 %110  ;;  %v116_v12 = vpop.permute.xlu0 %115 }
  0x9d   :  { %v121_v16 = vpop.permute.xlu1 %120  ;;  %v126_v24 = vpop.permute.xlu0 %125 }
  0xa1   :  { %v131_v29 = vpop.permute.xlu1 %130  ;;  %v136_v36 = vpop.permute.xlu0 %135 }
  0xa5   :  { %v141_v41 = vpop.permute.xlu1 %140 }
  0xdb   :  { %v767_v52 = vpop.f32.mrb[0].mxu0 }
  0xdc   :  { %v255_v53 = vadd.f32 %v767_v52, %v76_v46  ;;  %v246_v54 = vpop.f32.mrb[1].mxu0 }
  0xdd   :  { %v247_v56 = vadd.f32 %v246_v54, %v66_v45  ;;  %v768_v57 = vpop.f32.mrb[2].mxu0  ;;  %v890_v54 = vld [vmem:[%s1151_s3 + $0x10] sm:$0xff]  }
  0xde   :  { %v258_v58 = vadd.f32 %v768_v57, %v81_v48  ;;  %v249_v59 = vpop.f32.mrb[3].mxu0  ;;  %v311_v61 = vmax.f32 %v255_v53, 0.0  ;;  %v889_v53 = vld [vmem:[%s1151_s3 + $0x8] sm:$0xff]  }
  0xdf   :  { %v250_v60 = vadd.f32 %v249_v59, %v71_v47  ;;  %v309_v0 = vmax.f32 %v247_v56, 0.0  ;;  %v892_v56 = vld [vmem:[%s1151_s3 + $0x20] sm:$0xff]   ;;  %v893_v57 = vld [vmem:[%s1151_s3 + $0x28] sm:$0xff]   ;;  %v895_v59 = vld [vmem:[%s1151_s3 + $0x38] sm:$0xff]  }
  0xe0   :  { %v312_v62 = vmax.f32 %v258_v58, 0.0  ;;  %v894_v58 = vld [vmem:[%s1151_s3 + $0x30] sm:$0xff]  }
  0xe1   :  { %v310_v1 = vmax.f32 %v250_v60, 0.0  ;;  %v923_v60 = vmov 0.0|0.0  }
  0xe2   :  { %v342_v2 = vpack.c.bf16 %v312_v62, %v311_v61  ;;  %848 = vmatprep.subr.bf16.mxu0 %v923_v60  ;;  %v925_v61 = vmov 0.0   ;;  %v368_v62 = vpop.permute.xlu0 %367 }
  0xe3   :  { %v771_v4 = vpop.f32.mrb[4].mxu0  ;;  %v341_v5 = vpack.c.bf16 %v310_v1, %v309_v0  ;;  %845 = vmatprep.mubr.msk.f32.mxu0 %vm924_vm2, %v925_v61 }
  0xe4   :  { %v271_v6 = vadd.f32 %v771_v4, %v96_v51  ;;  %v262_v7 = vpop.f32.mrb[5].mxu0 }
  0xe5   :  { %v263_v8 = vadd.f32 %v262_v7, %v86_v49  ;;  %v772_v9 = vpop.f32.mrb[6].mxu0  ;;  %781 = vmatprep.subr.bf16.mxu1 %v341_v5 }
  0xe6   :  { %v274_v10 = vadd.f32 %v772_v9, %v101_v55  ;;  %v265_v11 = vpop.f32.mrb[7].mxu0  ;;  %782 = vmatpush3.bf16.msra.mxu1 %v341_v5  ;;  %v315_v14 = vmax.f32 %v271_v6, 0.0  ;;  %v891_v55 = vld [vmem:[%s1151_s3 + $0x18] sm:$0xff]   ;;  %v378_v0 = vpop.permute.xlu0 %377 }
  0xe7   :  { %v266_v13 = vadd.f32 %v265_v11, %v91_v50  ;;  %783 = vmatprep.subr.bf16.mxu1 %v342_v2  ;;  %v313_v17 = vmax.f32 %v263_v8, 0.0 }
  0xe8   :  { %v316_v15 = vmax.f32 %v274_v10, 0.0 }
  0xe9   :  { %v314_v18 = vmax.f32 %v266_v13, 0.0 }
  0xea   :  { %v344_v19 = vpack.c.bf16 %v316_v15, %v315_v14  ;;  %784 = vmatpush3.bf16.msra.mxu1 %v342_v2  ;;  %v388_v2 = vpop.permute.xlu0 %387 }
  0xeb   :  { %v343_v20 = vpack.c.bf16 %v314_v18, %v313_v17  ;;  %v775_v21 = vpop.f32.mrb[8].mxu0 }
  0xec   :  { %v287_v22 = vadd.f32 %v775_v21, %v116_v12  ;;  %v278_v23 = vpop.f32.mrb[9].mxu0 }
  0xed   :  { %v279_v25 = vadd.f32 %v278_v23, %v106_v63  ;;  %v776_v26 = vpop.f32.mrb[10].mxu0  ;;  %785 = vmatprep.subr.bf16.mxu1 %v343_v20  ;;  %v373_v63 = vpop.permute.xlu1 %372 }
  0xee   :  { %v290_v27 = vadd.f32 %v776_v26, %v121_v16  ;;  %v281_v28 = vpop.f32.mrb[11].mxu0  ;;  %786 = vmatpush3.bf16.msra.mxu1 %v343_v20  ;;  %v319_v31 = vmax.f32 %v287_v22, 0.0  ;;  %v398_v4 = vpop.permute.xlu0 %397 }
  0xef   :  { %v282_v30 = vadd.f32 %v281_v28, %v111_v3  ;;  %787 = vmatprep.subr.bf16.mxu1 %v344_v19  ;;  %v317_v33 = vmax.f32 %v279_v25, 0.0 }
  0xf0   :  { %v320_v32 = vmax.f32 %v290_v27, 0.0 }
  0xf1   :  { %v318_v34 = vmax.f32 %v282_v30, 0.0  ;;  %v383_v1 = vpop.permute.xlu1 %382 }
  0xf2   :  { %v346_v35 = vpack.c.bf16 %v320_v32, %v319_v31  ;;  %788 = vmatpush3.bf16.msra.mxu1 %v344_v19  ;;  %v408_v16 = vpop.permute.xlu0 %407 }
  0xf3   :  { %v345_v37 = vpack.c.bf16 %v318_v34, %v317_v33  ;;  %v779_v38 = vpop.f32.mrb[12].mxu0 }
  0xf4   :  { %v303_v39 = vadd.f32 %v779_v38, %v136_v36  ;;  %v294_v40 = vpop.f32.mrb[13].mxu0 }
  0xf5   :  { %v295_v42 = vadd.f32 %v294_v40, %v126_v24  ;;  %v780_v43 = vpop.f32.mrb[14].mxu0  ;;  %789 = vmatprep.subr.bf16.mxu1 %v345_v37  ;;  %v393_v3 = vpop.permute.xlu1 %392 }
  0xf6   :  { %v306_v44 = vadd.f32 %v780_v43, %v141_v41  ;;  %v297_v45 = vpop.f32.mrb[15].mxu0  ;;  %790 = vmatpush3.bf16.msra.mxu1 %v345_v37  ;;  %v323_v47 = vmax.f32 %v303_v39, 0.0 }
  0xf7   :  { %v298_v46 = vadd.f32 %v297_v45, %v131_v29  ;;  %791 = vmatprep.subr.bf16.mxu1 %v346_v35  ;;  %v321_v49 = vmax.f32 %v295_v42, 0.0  ;;  %v418_v29 = vpop.permute.xlu0 %417 }
  0xf8   :  { %v324_v48 = vmax.f32 %v306_v44, 0.0 }
  0xf9   :  { %v322_v50 = vmax.f32 %v298_v46, 0.0  ;;  %v403_v8 = vpop.permute.xlu1 %402 }
  0xfa   :  { %v348_v51 = vpack.c.bf16 %v324_v48, %v323_v47  ;;  %792 = vmatpush3.bf16.msra.mxu1 %v346_v35 }
  0xfb   :  { %v347_v52 = vpack.c.bf16 %v322_v50, %v321_v49  ;;  %v428_v41 = vpop.permute.xlu0 %427 }
  0xfd   :  { %793 = vmatprep.subr.bf16.mxu1 %v347_v52  ;;  %v413_v20 = vpop.permute.xlu1 %412 }
  0xfe   :  { %794 = vmatpush3.bf16.msra.mxu1 %v347_v52 }
  0xff   :  { %795 = vmatprep.subr.bf16.mxu1 %v348_v51 }
 0x101   :  { %v423_v33 = vpop.permute.xlu1 %422 }
 0x102   :  { %796 = vmatpush3.bf16.msra.mxu1 %v348_v51 }
 0x105   :  { %798 = vmatmul.mubr.bf16.vlgmr.msra.gmra.mrb[0].mxu1 %v889_v53  ;;  %v433_v46 = vpop.permute.xlu1 %432  ;;  %v438_v53 = vpop.permute.xlu0 %437 }
 0x106   :  { %801 = vmatprep.mubr.bf16.mxu1 %v890_v54 }
 0x10d   :  { %802 = vmatmul.mubr.bf16.gmra.mrb[4].mxu1 %v891_v55 }
 0x10e   :  { %805 = vmatprep.mubr.bf16.mxu1 %v892_v56 }
 0x115   :  { %806 = vmatmul.mubr.bf16.gmra.mrb[8].mxu1 %v893_v57 }
 0x116   :  { %809 = vmatprep.mubr.bf16.mxu1 %v894_v58  ;;  %v443_v58 = vpop.permute.xlu1 %442 }
 0x11d   :  { %810 = vmatmul.mubr.bf16.gmra.mrb[12].mxu1 %v895_v59 }
 0x1d8   :  { %v799_v5 = vpop.f32.mrb[0].mxu1 }
 0x1d9   :  { %v536_v6 = vadd.f32 %v799_v5, %v378_v0  ;;  %v527_v7 = vpop.f32.mrb[1].mxu1 }
 0x1da   :  { %v528_v9 = vadd.f32 %v527_v7, %v368_v62  ;;  %v800_v10 = vpop.f32.mrb[2].mxu1  ;;  %v606_v7 = vld [vmem:[%s1153_s5] sm:$0x1] }
 0x1db   :  { %v539_v11 = vadd.f32 %v800_v10, %v383_v1  ;;  %v530_v12 = vpop.f32.mrb[3].mxu1  ;;  %v592_v14 = vmax.f32 %v536_v6, 0.0 }
 0x1dc   :  { %v531_v13 = vadd.f32 %v530_v12, %v373_v63  ;;  %v590_v17 = vmax.f32 %v528_v9, 0.0 }
 0x1dd   :  { %v593_v15 = vmax.f32 %v539_v11, 0.0 }
 0x1de   :  { %v591_v18 = vmax.f32 %v531_v13, 0.0 }
 0x1df   :  { %v852_v19 = vpack.c.bf16 %v593_v15, %v592_v14 }
 0x1e0   :  { %v849_v21 = vpack.c.bf16 %v591_v18, %v590_v17  ;;  %v803_v22 = vpop.f32.mrb[4].mxu1 }
 0x1e1   :  { %v552_v23 = vadd.f32 %v803_v22, %v398_v4  ;;  %v543_v24 = vpop.f32.mrb[5].mxu1 }
 0x1e2   :  { %v544_v25 = vadd.f32 %v543_v24, %v388_v2  ;;  %v804_v26 = vpop.f32.mrb[6].mxu1  ;;  %850 = vmatpush3.bf16.msra.mxu0 %v849_v21 }
 0x1e3   :  { %v555_v27 = vadd.f32 %v804_v26, %v403_v8  ;;  %v546_v28 = vpop.f32.mrb[7].mxu1  ;;  %851 = vmatprep.subr.bf16.mxu0 %v923_v60  ;;  %v596_v31 = vmax.f32 %v552_v23, 0.0  ;;  %v608_v8 = vstv %s1154_s6 }
 0x1e4   :  { %v547_v30 = vadd.f32 %v546_v28, %v393_v3  ;;  %v594_v34 = vmax.f32 %v544_v25, 0.0 }
 0x1e5   :  { %v597_v32 = vmax.f32 %v555_v27, 0.0 }
 0x1e6   :  { %v595_v35 = vmax.f32 %v547_v30, 0.0  ;;  %853 = vmatpush3.bf16.msra.mxu0 %v852_v19 }
 0x1e7   :  { %v858_v36 = vpack.c.bf16 %v597_v32, %v596_v31  ;;  %854 = vmatprep.subr.bf16.mxu0 %v923_v60 }
 0x1e8   :  { %v855_v37 = vpack.c.bf16 %v595_v35, %v594_v34  ;;  %v807_v38 = vpop.f32.mrb[8].mxu1 }
 0x1e9   :  { %v568_v39 = vadd.f32 %v807_v38, %v418_v29  ;;  %v559_v40 = vpop.f32.mrb[9].mxu1 }
 0x1ea   :  { %v560_v42 = vadd.f32 %v559_v40, %v408_v16  ;;  %v808_v43 = vpop.f32.mrb[10].mxu1  ;;  %856 = vmatpush3.bf16.msra.mxu0 %v855_v37 }
 0x1eb   :  { %v571_v44 = vadd.f32 %v808_v43, %v423_v33  ;;  %v562_v45 = vpop.f32.mrb[11].mxu1  ;;  %857 = vmatprep.subr.bf16.mxu0 %v923_v60  ;;  %v600_v48 = vmax.f32 %v568_v39, 0.0 }
 0x1ec   :  { %v563_v47 = vadd.f32 %v562_v45, %v413_v20  ;;  %v598_v50 = vmax.f32 %v560_v42, 0.0 }
 0x1ed   :  { %v601_v49 = vmax.f32 %v571_v44, 0.0 }
 0x1ee   :  { %v599_v51 = vmax.f32 %v563_v47, 0.0  ;;  %859 = vmatpush3.bf16.msra.mxu0 %v858_v36 }
 0x1ef   :  { %v864_v52 = vpack.c.bf16 %v601_v49, %v600_v48  ;;  %860 = vmatprep.subr.bf16.mxu0 %v923_v60 }
 0x1f0   :  { %v861_v54 = vpack.c.bf16 %v599_v51, %v598_v50  ;;  %v811_v55 = vpop.f32.mrb[12].mxu1 }
 0x1f1   :  { %v584_v56 = vadd.f32 %v811_v55, %v438_v53  ;;  %v575_v57 = vpop.f32.mrb[13].mxu1 }
 0x1f2   :  { %v576_v59 = vadd.f32 %v575_v57, %v428_v41  ;;  %v812_v61 = vpop.f32.mrb[14].mxu1  ;;  %862 = vmatpush3.bf16.msra.mxu0 %v861_v54 }
 0x1f3   :  { %v587_v62 = vadd.f32 %v812_v61, %v443_v58  ;;  %v578_v63 = vpop.f32.mrb[15].mxu1  ;;  %863 = vmatprep.subr.bf16.mxu0 %v923_v60  ;;  %v604_v1 = vmax.f32 %v584_v56, 0.0 }
 0x1f4   :  { %v579_v0 = vadd.f32 %v578_v63, %v433_v46  ;;  %v602_v3 = vmax.f32 %v576_v59, 0.0 }
 0x1f5   :  { %v605_v2 = vmax.f32 %v587_v62, 0.0 }
 0x1f6   :  { %v603_v4 = vmax.f32 %v579_v0, 0.0  ;;  %865 = vmatpush3.bf16.msra.mxu0 %v864_v52 }
 0x1f7   :  { %v870_v5 = vpack.c.bf16 %v605_v2, %v604_v1  ;;  %866 = vmatprep.subr.bf16.mxu0 %v923_v60 }
 0x1f8   :  { %v867_v6 = vpack.c.bf16 %v603_v4, %v602_v3 }
 0x1fa   :  { %868 = vmatpush3.bf16.msra.mxu0 %v867_v6 }
 0x1fb   :  { %869 = vmatprep.subr.bf16.mxu0 %v923_v60 }
 0x1fe   :  { %871 = vmatpush3.bf16.msra.mxu0 %v870_v5 }
 0x201   :  { %846 = vmatmul.mubr.f32.vlgmr.msra.gmra.mrb[16].mxu0 %v606_v7 }
 0x2d4   :  { %v675_v9 = vpop.f32.mrb[16].mxu0 }
 0x2d5   :  { %v676_v10 = vadd.f32 %v675_v9, %v608_v8  ;;  %v847_v11 = vpop.f32.mrb[17].mxu0 }
 0x2d7   :  { %v679_v12 = vsub.f32 %v676_v10, %v676_v10 }
 0x2d9   :  { %v680_v13 = vmul.f32 1.442695, %v679_v12 }
 0x2db   :  { %896 = vpow2.f32 %v680_v13 }
 0x2e5   :  { %v897_v60 = vpop.eup %896 }
 0x2e6   :  { %682 = vst [vmem:[#allocation3] sm:$0x1] %v897_v60 }
 0x2e7   :  { %909 = shalt.err (!%p906_p4)
}
 0x2e8   :  { %s910_s27 = scalar_lea.hbm %s1155_s7, 16 }
 0x2e9   :  { %p911_p5 = scmp.ne.s32.totalorder %s1155_s7, %s910_s27  ;;  %p914_p6 = scmp.lt.u32.totalorder %s910_s27, %s1155_s7 }
 0x2eb   :  { %p916_p7 = pnand %p914_p6, %p911_p5 }
 0x2ed   :  { %919 = shalt.err (!%p916_p7)
}
 0x2ee   :  { %692 = dma.vmem_to_hbm [thread:$0]  %s690_s1, 16, %s1155_s7, [#allocation4]  }
 0x2ef   :  { %920 = dma.done.wait [#allocation4], 16  }
 0x2f0   :  { %921 = vsyncadd [#allocation4], 4294967280 }
 0x2f1   :  { %696 = vsyncpa [#allocation4], 1 }

</bundles_post_ra>
